<compile_context>
chip_gen: v6e
topology: v6e:2x2x1
jax: 0.10.0
libtpu: 0.0.40
codegen_flags: <defaults>
</compile_context>

<pallas_src>
import functools

import jax
import jax.numpy as jnp
from jax.experimental import pallas as pl
from jax.experimental.pallas import tpu as pltpu

LANE = 128  # TPU lane width


# --------------------------------------------------------------------------
# Kernel: one merged MLP, activations live entirely in vregs.
# --------------------------------------------------------------------------
def _merged_mlp_kernel(*refs, n_layers, matmul_dtype):
    """refs = [x, w0, b0, w1, b1, ..., out].

    tanh on hidden layers (MLP.activation), identity on the output layer
    (output_activation=None for both nets in ActorCritic).
    """
    x_ref = refs[0]
    param_refs = refs[1:1 + 2 * n_layers]
    out_ref = refs[-1]

    h = x_ref[...]
    for li in range(n_layers):
        w = param_refs[2 * li][...]
        b = param_refs[2 * li + 1][...]          # (1, out) broadcasts over batch
        y = jnp.dot(h.astype(matmul_dtype), w.astype(matmul_dtype),
                    preferred_element_type=jnp.float32) + b
        h = jnp.tanh(y) if li < n_layers - 1 else y   # tanh on EUP, f32
    out_ref[...] = h.astype(out_ref.dtype)


# --------------------------------------------------------------------------
# Host-side param merging: two MLPs -> one block-diagonal MLP.
# --------------------------------------------------------------------------
def _block_diag(a, b):
    out = jnp.zeros((a.shape[0] + b.shape[0], a.shape[1] + b.shape[1]), a.dtype)
    out = out.at[:a.shape[0], :a.shape[1]].set(a)
    out = out.at[a.shape[0]:, a.shape[1]:].set(b)
    return out


def merge_mlp_params(policy_params, value_params):
    """Merge policy+value MLPs (same depth, same input) into one MLP whose
    hidden layers are block-diagonal.  Returns (merged params, padded out dim).
    Mathematically identical: tanh is elementwise so the two sub-networks
    never mix."""
    assert len(policy_params) == len(value_params), "nets must share depth"
    merged = []
    for i, ((pw, pb), (vw, vb)) in enumerate(zip(policy_params, value_params)):
        if i == 0:
            w = jnp.concatenate([pw, vw], axis=1)      # both consume the same x
        else:
            w = _block_diag(pw, vw)
        b = jnp.concatenate([pb, vb], axis=0)
        merged.append((w, b))

    # Zero-pad the final layer's output dim to a full 128-lane block so stores
    # are lane-dense (unmasked vst).
    w, b = merged[-1]
    out_dim = w.shape[1]
    out_pad = pl.cdiv(out_dim, LANE) * LANE
    if out_pad != out_dim:
        w = jnp.pad(w, ((0, 0), (0, out_pad - out_dim)))
        b = jnp.pad(b, ((0, out_pad - out_dim),))
    merged[-1] = (w, b)
    return merged, out_pad


# --------------------------------------------------------------------------
# Wrapper: single pallas_call -> (policy logits, value).
# --------------------------------------------------------------------------
def fused_actor_critic_logits_value(x, policy_params, value_params,
                                    *, matmul_dtype=jnp.float32,
                                    batch_tile=512):
    B, in_dim = x.shape
    act_dim = policy_params[-1][0].shape[1]
    val_dim = value_params[-1][0].shape[1]

    merged, out_pad = merge_mlp_params(policy_params, value_params)
    n_layers = len(merged)

    # Flatten params; biases kept 2-D (1, out) for vreg layout.
    flat = []
    for w, b in merged:
        flat.append(w)
        flat.append(b.reshape(1, -1))

    # Batch tiling: large batches use `batch_tile`-row tiles (parallel across
    # cores); tiny batches are one 8-row-aligned block.  Pad the batch up to a
    # multiple of bt so unaligned sizes still get a pipelined cdiv grid.
    if B >= batch_tile:
        bt = batch_tile
    else:
        bt = max(8, ((B + 7) // 8) * 8)
    B_pad = pl.cdiv(B, bt) * bt
    if B_pad != B:
        x = jnp.pad(x, ((0, B_pad - B), (0, 0)))
    grid = (B_pad // bt,)

    x_spec = pl.BlockSpec((bt, in_dim), lambda i: (i, 0))
    # Constant block index -> weights stay resident in VMEM across the grid.
    param_specs = [pl.BlockSpec(p.shape, lambda i: (0, 0)) for p in flat]
    out_spec = pl.BlockSpec((bt, out_pad), lambda i: (i, 0))
    out_shape = jax.ShapeDtypeStruct((B_pad, out_pad), x.dtype)

    kernel = functools.partial(_merged_mlp_kernel,
                               n_layers=n_layers,
                               matmul_dtype=matmul_dtype)

    out = pl.pallas_call(
        kernel,
        out_shape=out_shape,
        grid=grid,
        in_specs=[x_spec] + param_specs,
        out_specs=out_spec,
        compiler_params=pltpu.CompilerParams(
            dimension_semantics=("parallel",)),
    )(x, *flat)

    logits = out[:B, :act_dim]
    v = out[:B, act_dim:act_dim + val_dim]
    return logits, v


def actor_critic_forward(key, x, policy_params, value_params, a=None):
    """Replicates ActorCritic.forward for a Discrete action space:
    (pi, logp, logp_pi) from CategoricalPolicy; v from the value MLP."""
    logits, v = fused_actor_critic_logits_value(x, policy_params, value_params)
    v = jnp.squeeze(v, axis=-1)                 # value MLP has output_squeeze=True

    # TODO(synk): Categorical sampling / log_prob (torch.distributions) are tiny
    # elementwise ops kept in plain JAX outside the Pallas kernel.
    log_probs = jax.nn.log_softmax(logits, axis=-1)
    pi = jax.random.categorical(key, logits, axis=-1)
    logp_pi = jnp.take_along_axis(log_probs, pi[:, None], axis=-1)[:, 0]
    logp = None
    if a is not None:
        logp = jnp.take_along_axis(log_probs, a[:, None], axis=-1)[:, 0]
    return pi, logp, logp_pi, v


# --------------------------------------------------------------------------
# Init / reference (plain JAX) for the sanity check.
# --------------------------------------------------------------------------
def init_mlp_params(key, layers):
    """PyTorch nn.Linear default weight init (uniform +/- 1/sqrt(fan_in));
    bias zeroed as in MLP.__init__ (nn.init.zeros_). Stored as (in, out)."""
    params = []
    for i, out_dim in enumerate(layers[1:]):
        in_dim = layers[i]
        key, wk = jax.random.split(key)
        bound = 1.0 / float(jnp.sqrt(jnp.float32(in_dim)))
        w = jax.random.uniform(wk, (in_dim, out_dim), jnp.float32, -bound, bound)
        b = jnp.zeros((out_dim,), jnp.float32)
        params.append((w, b))
    return params


def _mlp_ref(x, params):
    h = x
    for i, (w, b) in enumerate(params):
        h = h @ w + b
        if i < len(params) - 1:
            h = jnp.tanh(h)
    return h


if __name__ == "__main__":
    key = jax.random.PRNGKey(0)
    in_features = 32
    hidden_sizes = (64, 64)     # ActorCritic default -> merged hidden width 128
    action_dim = 6              # Discrete action space -> CategoricalPolicy
    batch = 8

    k_pol, k_val, k_x, k_a, k_sample = jax.random.split(key, 5)
    policy_params = init_mlp_params(
        k_pol, [in_features] + list(hidden_sizes) + [action_dim])
    value_params = init_mlp_params(
        k_val, [in_features] + list(hidden_sizes) + [1])
    x = jax.random.normal(k_x, (batch, in_features), jnp.float32)
    a = jax.random.randint(k_a, (batch,), 0, action_dim)

    pi, logp, logp_pi, v = jax.jit(actor_critic_forward)(
        k_sample, x, policy_params, value_params, a)
    (pi, logp, logp_pi, v) = jax.block_until_ready((pi, logp, logp_pi, v))

    # Sanity check the fused (merged-net) kernel against a plain-JAX reference.
    logits_k, v_k = fused_actor_critic_logits_value(x, policy_params, value_params)
    logits_k, v_k = jax.block_until_ready((logits_k, v_k))
    logits_r = _mlp_ref(x, policy_params)
    v_r = _mlp_ref(x, value_params)

    assert logits_k.shape == (batch, action_dim)
    assert v_k.shape == (batch, 1)
    assert jnp.allclose(logits_k, logits_r, atol=1e-5, rtol=1e-5)
    assert jnp.allclose(v_k, v_r, atol=1e-5, rtol=1e-5)
    assert pi.shape == (batch,)
    assert logp.shape == (batch,)
    assert logp_pi.shape == (batch,)
    assert v.shape == (batch,)
    assert bool(jnp.all(jnp.isfinite(logp_pi))) and bool(jnp.all(jnp.isfinite(logp)))

    # Exercise the padded/unaligned-batch grid path (B not a multiple of 8).
    batch2 = 13
    x2 = jax.random.normal(jax.random.PRNGKey(7), (batch2, in_features), jnp.float32)
    logits2, v2 = jax.block_until_ready(
        fused_actor_critic_logits_value(x2, policy_params, value_params))
    assert logits2.shape == (batch2, action_dim)
    assert v2.shape == (batch2, 1)
    assert jnp.allclose(logits2, _mlp_ref(x2, policy_params), atol=1e-5, rtol=1e-5)
    assert jnp.allclose(v2, _mlp_ref(x2, value_params), atol=1e-5, rtol=1e-5)

    print("KERNEL_OK")
</pallas_src>

<mosaic_0001>
module attributes {stable_mosaic.version = 11 : i64} {
  func.func @_merged_mlp_kernel(%arg0: i32, %arg1: memref<8x32xf32, #tpu.memory_space<vmem>>, %arg2: memref<32x128xf32, #tpu.memory_space<vmem>>, %arg3: memref<1x128xf32, #tpu.memory_space<vmem>>, %arg4: memref<128x128xf32, #tpu.memory_space<vmem>>, %arg5: memref<1x128xf32, #tpu.memory_space<vmem>>, %arg6: memref<128x128xf32, #tpu.memory_space<vmem>>, %arg7: memref<1x128xf32, #tpu.memory_space<vmem>>, %arg8: memref<8x128xf32, #tpu.memory_space<vmem>>) attributes {dimension_semantics = [#tpu.dimension_semantics<parallel>], iteration_bounds = array<i64: 1>, scalar_prefetch = 0 : i64, scratch_operands = 0 : i64, tpu.core_type = #tpu.core_type<tc>, window_params = [{transform_indices = @transform_0, window_bounds = array<i64: 8, 32>}, {pipeline_mode = #tpu.pipeline_mode<synchronous>, transform_indices = @transform_1, window_bounds = array<i64: 32, 128>}, {pipeline_mode = #tpu.pipeline_mode<synchronous>, transform_indices = @transform_2, window_bounds = array<i64: 1, 128>}, {pipeline_mode = #tpu.pipeline_mode<synchronous>, transform_indices = @transform_3, window_bounds = array<i64: 128, 128>}, {pipeline_mode = #tpu.pipeline_mode<synchronous>, transform_indices = @transform_4, window_bounds = array<i64: 1, 128>}, {pipeline_mode = #tpu.pipeline_mode<synchronous>, transform_indices = @transform_5, window_bounds = array<i64: 128, 128>}, {pipeline_mode = #tpu.pipeline_mode<synchronous>, transform_indices = @transform_6, window_bounds = array<i64: 1, 128>}, {transform_indices = @transform_7, window_bounds = array<i64: 8, 128>}]} {
    %c0 = arith.constant 0 : index
    %c0_0 = arith.constant 0 : index
    %0 = vector.load %arg1[%c0, %c0_0] : memref<8x32xf32, #tpu.memory_space<vmem>>, vector<8x32xf32>
    %c0_1 = arith.constant 0 : index
    %c0_2 = arith.constant 0 : index
    %1 = vector.load %arg2[%c0_1, %c0_2] : memref<32x128xf32, #tpu.memory_space<vmem>>, vector<32x128xf32>
    %c0_3 = arith.constant 0 : index
    %c0_4 = arith.constant 0 : index
    %2 = vector.load %arg3[%c0_3, %c0_4] : memref<1x128xf32, #tpu.memory_space<vmem>>, vector<1x128xf32>
    %cst = arith.constant dense<0.000000e+00> : vector<8x128xf32>
    %3 = tpu.matmul %0, %1, %cst {dimension_numbers = #tpu.dot_dimension_numbers<[1], [0], [0], [1], [0, 0, 1, 1], [], []>} : vector<8x32xf32>, vector<32x128xf32>, vector<8x128xf32> -> vector<8x128xf32>
    %4 = vector.broadcast %2 : vector<1x128xf32> to vector<8x128xf32>
    %5 = arith.addf %3, %4 : vector<8x128xf32>
    %6 = math.tanh %5 : vector<8x128xf32>
    %c0_5 = arith.constant 0 : index
    %c0_6 = arith.constant 0 : index
    %7 = vector.load %arg4[%c0_5, %c0_6] : memref<128x128xf32, #tpu.memory_space<vmem>>, vector<128x128xf32>
    %c0_7 = arith.constant 0 : index
    %c0_8 = arith.constant 0 : index
    %8 = vector.load %arg5[%c0_7, %c0_8] : memref<1x128xf32, #tpu.memory_space<vmem>>, vector<1x128xf32>
    %cst_9 = arith.constant dense<0.000000e+00> : vector<8x128xf32>
    %9 = tpu.matmul %6, %7, %cst_9 {dimension_numbers = #tpu.dot_dimension_numbers<[1], [0], [0], [1], [0, 0, 1, 1], [], []>} : vector<8x128xf32>, vector<128x128xf32>, vector<8x128xf32> -> vector<8x128xf32>
    %10 = vector.broadcast %8 : vector<1x128xf32> to vector<8x128xf32>
    %11 = arith.addf %9, %10 : vector<8x128xf32>
    %12 = math.tanh %11 : vector<8x128xf32>
    %c0_10 = arith.constant 0 : index
    %c0_11 = arith.constant 0 : index
    %13 = vector.load %arg6[%c0_10, %c0_11] : memref<128x128xf32, #tpu.memory_space<vmem>>, vector<128x128xf32>
    %c0_12 = arith.constant 0 : index
    %c0_13 = arith.constant 0 : index
    %14 = vector.load %arg7[%c0_12, %c0_13] : memref<1x128xf32, #tpu.memory_space<vmem>>, vector<1x128xf32>
    %cst_14 = arith.constant dense<0.000000e+00> : vector<8x128xf32>
    %15 = tpu.matmul %12, %13, %cst_14 {dimension_numbers = #tpu.dot_dimension_numbers<[1], [0], [0], [1], [0, 0, 1, 1], [], []>} : vector<8x128xf32>, vector<128x128xf32>, vector<8x128xf32> -> vector<8x128xf32>
    %16 = vector.broadcast %14 : vector<1x128xf32> to vector<8x128xf32>
    %17 = arith.addf %15, %16 : vector<8x128xf32>
    %c0_15 = arith.constant 0 : index
    %c0_16 = arith.constant 0 : index
    %18 = vector.load %arg8[%c0_15, %c0_16] : memref<8x128xf32, #tpu.memory_space<vmem>>, vector<8x128xf32>
    tpu.vector_store %arg8[%c0_15, %c0_16], %17 {strides = array<i32>} : memref<8x128xf32, #tpu.memory_space<vmem>>, vector<8x128xf32>,
    return
  }
  func.func @transform_0(%arg0: i32) -> (i32, i32) {
    %c0_i32 = arith.constant 0 : i32
    %c0_i32_0 = arith.constant 0 : i32
    return %arg0, %c0_i32 : i32, i32
  }
  func.func @transform_1(%arg0: i32) -> (i32, i32) {
    %c0_i32 = arith.constant 0 : i32
    %c0_i32_0 = arith.constant 0 : i32
    %c0_i32_1 = arith.constant 0 : i32
    return %c0_i32, %c0_i32_0 : i32, i32
  }
  func.func @transform_2(%arg0: i32) -> (i32, i32) {
    %c0_i32 = arith.constant 0 : i32
    %c0_i32_0 = arith.constant 0 : i32
    %c0_i32_1 = arith.constant 0 : i32
    return %c0_i32, %c0_i32_0 : i32, i32
  }
  func.func @transform_3(%arg0: i32) -> (i32, i32) {
    %c0_i32 = arith.constant 0 : i32
    %c0_i32_0 = arith.constant 0 : i32
    %c0_i32_1 = arith.constant 0 : i32
    return %c0_i32, %c0_i32_0 : i32, i32
  }
  func.func @transform_4(%arg0: i32) -> (i32, i32) {
    %c0_i32 = arith.constant 0 : i32
    %c0_i32_0 = arith.constant 0 : i32
    %c0_i32_1 = arith.constant 0 : i32
    return %c0_i32, %c0_i32_0 : i32, i32
  }
  func.func @transform_5(%arg0: i32) -> (i32, i32) {
    %c0_i32 = arith.constant 0 : i32
    %c0_i32_0 = arith.constant 0 : i32
    %c0_i32_1 = arith.constant 0 : i32
    return %c0_i32, %c0_i32_0 : i32, i32
  }
  func.func @transform_6(%arg0: i32) -> (i32, i32) {
    %c0_i32 = arith.constant 0 : i32
    %c0_i32_0 = arith.constant 0 : i32
    %c0_i32_1 = arith.constant 0 : i32
    return %c0_i32, %c0_i32_0 : i32, i32
  }
  func.func @transform_7(%arg0: i32) -> (i32, i32) {
    %c0_i32 = arith.constant 0 : i32
    %c0_i32_0 = arith.constant 0 : i32
    return %arg0, %c0_i32 : i32, i32
  }
}

</mosaic_0001>

<bundles_post_ra>
// kernel: actor_critic_forward.1
= control target key start
LH: loop header
LB: loop body
LE: loop exit
PB: predicated region body
PF: predicated region fallthrough
CT: control target
= control target key end

     0   :  { %v435_v0 = vmov 0.0   ;;  %vm436_vm0 = vmmov 0   ;;  %vm38_vm1 = vcmask 261120   ;;  %s642_s1 = inlined_call_operand.vmem [shape: f32[32,128], index: 1, kind: input, shape index: {}]   ;;  %s643_s3 = inlined_call_operand.vmem [shape: f32[128,128], index: 3, kind: input, shape index: {}]   ;;  %s644_s0 = inlined_call_operand.vmem [shape: f32[8,32], index: 0, kind: input, shape index: {}]   ;;  %s645_s5 = inlined_call_operand.vmem [shape: f32[128,128], index: 5, kind: input, shape index: {}]   ;;  %s646_s2 = inlined_call_operand.vmem [shape: f32[1,128], index: 2, kind: input, shape index: {}]   ;;  %s647_s4 = inlined_call_operand.vmem [shape: f32[1,128], index: 4, kind: input, shape index: {}]   ;;  %s648_s6 = inlined_call_operand.vmem [shape: f32[1,128], index: 6, kind: input, shape index: {}]   ;;  %s649_s7 = inlined_call_operand.vmem [shape: f32[8,128], index: 7, kind: output, shape index: {}]  }
   0x1   :  { %348 = vmatprep.subr.mxu0 %v435_v0  ;;  %v30_v1 = vld [vmem:[%s642_s1 + $0x18] sm:$0xff]  ;;  %v29_v2 = vld [vmem:[%s642_s1 + $0x10] sm:$0xff]  ;;  %356 = vmatprep.mubr.msk.f32.mxu0 %vm436_vm0, %v435_v0  ;;  %v28_v4 = vld [vmem:[%s642_s1 + $0x8] sm:$0xff] }
   0x2   :  { %349 = vmatpush3.msra.mxu0 %v30_v1  ;;  %359 = vmatprep.subr.mxu1 %v435_v0  ;;  %v128_v3 = vld [vmem:[%s643_s3 + $0x78] sm:$0xff]  ;;  %v127_v5 = vld [vmem:[%s643_s3 + $0x70] sm:$0xff]  ;;  %v126_v6 = vld [vmem:[%s643_s3 + $0x68] sm:$0xff] }
   0x3   :  { %350 = vmatprep.subr.mxu0 %v435_v0  ;;  %360 = vmatpush3.msra.mxu1 %v128_v3  ;;  %v27_v7 = vld [vmem:[%s642_s1] sm:$0xff]  ;;  %v124_v10 = vld [vmem:[%s643_s3 + $0x58] sm:$0xff]  ;;  %v123_v11 = vld [vmem:[%s643_s3 + $0x50] sm:$0xff] }
   0x4   :  { %351 = vmatpush3.msra.mxu0 %v29_v2  ;;  %361 = vmatprep.subr.mxu1 %v435_v0  ;;  %v26_v8 = vld [vmem:[%s644_s0] sm:$0xff]  ;;  %v122_v12 = vld [vmem:[%s643_s3 + $0x48] sm:$0xff]  ;;  %v120_v14 = vld [vmem:[%s643_s3 + $0x38] sm:$0xff] }
   0x5   :  { %352 = vmatprep.subr.mxu0 %v435_v0  ;;  %362 = vmatpush3.msra.mxu1 %v127_v5  ;;  %v125_v9 = vld [vmem:[%s643_s3 + $0x60] sm:$0xff]  ;;  %v119_v15 = vld [vmem:[%s643_s3 + $0x30] sm:$0xff]  ;;  %v118_v16 = vld [vmem:[%s643_s3 + $0x28] sm:$0xff] }
   0x6   :  { %353 = vmatpush3.msra.mxu0 %v28_v4  ;;  %363 = vmatprep.subr.mxu1 %v435_v0  ;;  %v121_v13 = vld [vmem:[%s643_s3 + $0x40] sm:$0xff]  ;;  %v116_v18 = vld [vmem:[%s643_s3 + $0x18] sm:$0xff]  ;;  %v115_v19 = vld [vmem:[%s643_s3 + $0x10] sm:$0xff] }
   0x7   :  { %354 = vmatprep.subr.mxu0 %v435_v0  ;;  %364 = vmatpush3.msra.mxu1 %v126_v6  ;;  %v117_v17 = vld [vmem:[%s643_s3 + $0x20] sm:$0xff]  ;;  %v114_v20 = vld [vmem:[%s643_s3 + $0x8] sm:$0xff]  ;;  %v222_v22 = vld [vmem:[%s645_s5 + $0x78] sm:$0xff] }
   0x8   :  { %355 = vmatpush3.msra.mxu0 %v27_v7  ;;  %365 = vmatprep.subr.mxu1 %v435_v0  ;;  %v113_v21 = vld [vmem:[%s643_s3] sm:$0xff]  ;;  %v221_v23 = vld [vmem:[%s645_s5 + $0x70] sm:$0xff]  ;;  %v220_v24 = vld [vmem:[%s645_s5 + $0x68] sm:$0xff] }
   0x9   :  { %357 = vmatmul.mubr.msk.f32.vlgmr.msra.gmra.mxu0 %vm38_vm1, %v26_v8  ;;  %366 = vmatpush3.msra.mxu1 %v125_v9  ;;  %v219_v25 = vld [vmem:[%s645_s5 + $0x60] sm:$0xff]  ;;  %v218_v26 = vld [vmem:[%s645_s5 + $0x58] sm:$0xff]  ;;  %v217_v27 = vld [vmem:[%s645_s5 + $0x50] sm:$0xff] }
   0xa   :  { %367 = vmatprep.subr.mxu1 %v435_v0  ;;  %391 = vmatprep.mubr.msk.f32.mxu1 %vm436_vm0, %v435_v0  ;;  %v216_v28 = vld [vmem:[%s645_s5 + $0x48] sm:$0xff]  ;;  %v305_v29 = vld [vmem:[%s646_s2] ss:$0 sm:$0xff]  ;;  %v214_v35 = vld [vmem:[%s645_s5 + $0x38] sm:$0xff] }
   0xb   :  { %368 = vmatpush3.msra.mxu1 %v124_v10  ;;  %394 = vmatprep.subr.mxu0 %v435_v0  ;;  %v215_v34 = vld [vmem:[%s645_s5 + $0x40] sm:$0xff]  ;;  %v213_v36 = vld [vmem:[%s645_s5 + $0x30] sm:$0xff]  ;;  %v212_v37 = vld [vmem:[%s645_s5 + $0x28] sm:$0xff] }
   0xc   :  { %369 = vmatprep.subr.mxu1 %v435_v0  ;;  %426 = vmatprep.mubr.msk.f32.mxu0 %vm436_vm0, %v435_v0  ;;  %v211_v38 = vld [vmem:[%s645_s5 + $0x20] sm:$0xff]  ;;  %v210_v39 = vld [vmem:[%s645_s5 + $0x18] sm:$0xff]  ;;  %v209_v40 = vld [vmem:[%s645_s5 + $0x10] sm:$0xff] }
   0xd   :  { %370 = vmatpush3.msra.mxu1 %v123_v11  ;;  %395 = vmatpush3.msra.mxu0 %v222_v22  ;;  %v208_v41 = vld [vmem:[%s645_s5 + $0x8] sm:$0xff]  ;;  %v207_v42 = vld [vmem:[%s645_s5] sm:$0xff] }
   0xe   :  { %371 = vmatprep.subr.mxu1 %v435_v0  ;;  %396 = vmatprep.subr.mxu0 %v435_v0  ;;  %v307_v43 = vld [vmem:[%s647_s4] ss:$0 sm:$0xff] }
   0xf   :  { %372 = vmatpush3.msra.mxu1 %v122_v12  ;;  %397 = vmatpush3.msra.mxu0 %v221_v23  ;;  %v308_v48 = vld [vmem:[%s648_s6] ss:$0 sm:$0xff] }
  0x10   :  { %373 = vmatprep.subr.mxu1 %v435_v0  ;;  %398 = vmatprep.subr.mxu0 %v435_v0 }
  0x11   :  { %374 = vmatpush3.msra.mxu1 %v121_v13  ;;  %399 = vmatpush3.msra.mxu0 %v220_v24 }
  0x12   :  { %375 = vmatprep.subr.mxu1 %v435_v0  ;;  %400 = vmatprep.subr.mxu0 %v435_v0 }
  0x13   :  { %376 = vmatpush3.msra.mxu1 %v120_v14  ;;  %401 = vmatpush3.msra.mxu0 %v219_v25 }
  0x14   :  { %377 = vmatprep.subr.mxu1 %v435_v0  ;;  %402 = vmatprep.subr.mxu0 %v435_v0 }
  0x15   :  { %378 = vmatpush3.msra.mxu1 %v119_v15  ;;  %403 = vmatpush3.msra.mxu0 %v218_v26 }
  0x16   :  { %379 = vmatprep.subr.mxu1 %v435_v0  ;;  %404 = vmatprep.subr.mxu0 %v435_v0 }
  0x17   :  { %380 = vmatpush3.msra.mxu1 %v118_v16  ;;  %405 = vmatpush3.msra.mxu0 %v217_v27 }
  0x18   :  { %381 = vmatprep.subr.mxu1 %v435_v0  ;;  %406 = vmatprep.subr.mxu0 %v435_v0 }
  0x19   :  { %382 = vmatpush3.msra.mxu1 %v117_v17  ;;  %407 = vmatpush3.msra.mxu0 %v216_v28 }
  0x1a   :  { %383 = vmatprep.subr.mxu1 %v435_v0  ;;  %408 = vmatprep.subr.mxu0 %v435_v0 }
  0x1b   :  { %384 = vmatpush3.msra.mxu1 %v116_v18  ;;  %409 = vmatpush3.msra.mxu0 %v215_v34 }
  0x1c   :  { %385 = vmatprep.subr.mxu1 %v435_v0  ;;  %410 = vmatprep.subr.mxu0 %v435_v0 }
  0x1d   :  { %386 = vmatpush3.msra.mxu1 %v115_v19  ;;  %411 = vmatpush3.msra.mxu0 %v214_v35 }
  0x1e   :  { %387 = vmatprep.subr.mxu1 %v435_v0  ;;  %412 = vmatprep.subr.mxu0 %v435_v0 }
  0x1f   :  { %388 = vmatpush3.msra.mxu1 %v114_v20  ;;  %413 = vmatpush3.msra.mxu0 %v213_v36 }
  0x20   :  { %389 = vmatprep.subr.mxu1 %v435_v0  ;;  %414 = vmatprep.subr.mxu0 %v435_v0 }
  0x21   :  { %390 = vmatpush3.msra.mxu1 %v113_v21  ;;  %415 = vmatpush3.msra.mxu0 %v212_v37 }
  0x22   :  { %416 = vmatprep.subr.mxu0 %v435_v0 }
  0x23   :  { %417 = vmatpush3.msra.mxu0 %v211_v38 }
  0x24   :  { %418 = vmatprep.subr.mxu0 %v435_v0 }
  0x25   :  { %419 = vmatpush3.msra.mxu0 %v210_v39 }
  0x26   :  { %420 = vmatprep.subr.mxu0 %v435_v0 }
  0x27   :  { %421 = vmatpush3.msra.mxu0 %v209_v40 }
  0x28   :  { %422 = vmatprep.subr.mxu0 %v435_v0 }
  0x29   :  { %423 = vmatpush3.msra.mxu0 %v208_v41 }
  0x2a   :  { %424 = vmatprep.subr.mxu0 %v435_v0 }
  0x2b   :  { %425 = vmatpush3.msra.mxu0 %v207_v42 }
  0xc9   :  { %v108_v30 = vpop.f32.mrf.mxu0 }
  0xca   :  { %v109_v31 = vadd.f32 %v305_v29, %v108_v30 }
  0xcb   :  { %v358_v32 = vpop.f32.mrf.mxu0 }
  0xcc   :  { %431 = vtanh.f32 %v109_v31 }
  0xd9   :  { %v432_v33 = vpop.eup %431 }
  0xda   :  { %392 = vmatmul.mubr.f32.vlgmr.msra.gmra.mxu1 %v432_v33 }
 0x19a   :  { %v202_v44 = vpop.f32.mrf.mxu1 }
 0x19b   :  { %v203_v45 = vadd.f32 %v307_v43, %v202_v44 }
 0x19c   :  { %v393_v46 = vpop.f32.mrf.mxu1 }
 0x19d   :  { %433 = vtanh.f32 %v203_v45 }
 0x1aa   :  { %v434_v47 = vpop.eup %433 }
 0x1ab   :  { %427 = vmatmul.mubr.f32.vlgmr.msra.gmra.mxu0 %v434_v47 }
 0x26b   :  { %v296_v49 = vpop.f32.mrf.mxu0 }
 0x26c   :  { %v297_v50 = vadd.f32 %v308_v48, %v296_v49 }
 0x26d   :  { %v428_v51 = vpop.f32.mrf.mxu0 }
 0x26e   :  { %300 = vst [vmem:[%s649_s7] sm:$0xff] %v297_v50 }

</bundles_post_ra>
